<compile_context>
chip_gen: v5e
topology: v5e:2x2
jax: 0.10.0
libtpu: 0.0.40
codegen_flags: <defaults>
</compile_context>

<pallas_src>
import jax
import jax.numpy as jnp
from jax import lax
from jax.experimental import pallas as pl
from jax.experimental.pallas import tpu as pltpu

EPS = 1e-5


def _fused_conv_bn_kernel(x_ref, w_ref, gb_ref, o_ref):
    # x_ref: (C_in, P)   w_ref: (C_out, C_in)   gb_ref: (C_out, 2) = [gamma|beta]
    # o_ref: (C_out, P)
    y = jnp.dot(w_ref[...], x_ref[...], preferred_element_type=jnp.float32)

    inv_p = 1.0 / y.shape[1]                       # true element count (no padding)
    mean = jnp.sum(y, axis=1, keepdims=True) * inv_p
    centered = y - mean
    var = jnp.sum(centered * centered, axis=1, keepdims=True) * inv_p  # biased var
    inv_std = lax.rsqrt(var + EPS)                 # EUP slot — essentially free

    scale = gb_ref[:, 0:1] * inv_std               # gamma * rsqrt(var + eps)
    beta = gb_ref[:, 1:2]
    o_ref[...] = (centered * scale + beta).astype(o_ref.dtype)


@jax.jit
def conv1x1_batchnorm(x_nchw, weight, gamma, beta):
    """x_nchw: [N, C_in, H, W]; weight: [C_out, C_in]; gamma/beta: [C_out]."""
    n, c_in, h, w_sp = x_nchw.shape
    c_out = weight.shape[0]
    p = n * h * w_sp

    # NCHW -> [C_in, N*H*W]. For N == 1 the transpose is a free reshape.
    x_flat = jnp.transpose(x_nchw, (1, 0, 2, 3)).reshape(c_in, p)
    gb = jnp.stack([gamma, beta], axis=1)          # (C_out, 2): one tiny DMA

    # TODO(synk): BatchNorm2d running_mean/running_var (momentum=0.1) buffer
    # updates are not emitted; only the forward output tensor is produced.

    out_flat = pl.pallas_call(
        _fused_conv_bn_kernel,
        out_shape=jax.ShapeDtypeStruct((c_out, p), jnp.float32),
        grid_spec=pltpu.PrefetchScalarGridSpec(
            num_scalar_prefetch=0,
            grid=(1,),
            # Full-array block shapes (legal: equal to the array dims) -> no
            # jnp.pad on input and no output re-slice; tail store is masked.
            in_specs=[
                pl.BlockSpec((c_in, p), lambda i: (0, 0)),
                pl.BlockSpec((c_out, c_in), lambda i: (0, 0)),
                pl.BlockSpec((c_out, 2), lambda i: (0, 0)),
            ],
            out_specs=pl.BlockSpec((c_out, p), lambda i: (0, 0)),
        ),
        compiler_params=pltpu.CompilerParams(
            dimension_semantics=("arbitrary",),
        ),
    )(x_flat, weight, gb)

    # [C_out, P] -> NCHW (free for N == 1).
    out = out_flat.reshape(c_out, n, h, w_sp)
    return jnp.transpose(out, (1, 0, 2, 3))


if __name__ == "__main__":
    key = jax.random.PRNGKey(0)
    k_x, k_w = jax.random.split(key)

    # Matches M(): Conv2d(48, 48, 1x1, bias=False) + BatchNorm2d(48) on [1, 48, 14, 14].
    N, C, H, W = 1, 48, 14, 14
    x = jax.random.normal(k_x, (N, C, H, W), dtype=jnp.float32)

    # Deterministic parameter init (conv: scaled normal; BN affine: PyTorch defaults).
    fan_in = C  # 1x1 kernel
    conv_w = jax.random.normal(k_w, (C, C), dtype=jnp.float32) * (1.0 / jnp.sqrt(fan_in))
    bn_gamma = jnp.ones((C,), dtype=jnp.float32)
    bn_beta = jnp.zeros((C,), dtype=jnp.float32)

    out = conv1x1_batchnorm(x, conv_w, bn_gamma, bn_beta)
    jax.block_until_ready(out)
    assert out.shape == (N, C, H, W), out.shape

    # Reference (pure JAX): 1x1 conv + training-mode BN with biased batch stats.
    y_ref = jnp.einsum("oi,nihw->nohw", conv_w, x)
    m_ref = y_ref.mean(axis=(0, 2, 3), keepdims=True)
    v_ref = y_ref.var(axis=(0, 2, 3), keepdims=True)
    ref = (y_ref - m_ref) * lax.rsqrt(v_ref + EPS)
    ref = ref * bn_gamma.reshape(1, C, 1, 1) + bn_beta.reshape(1, C, 1, 1)
    max_err = float(jnp.max(jnp.abs(out - ref)))
    assert max_err < 2e-3, f"max abs error {max_err}"

    print("KERNEL_OK")
</pallas_src>

<mosaic_0001>
module attributes {stable_mosaic.version = 11 : i64} {
  func.func @_fused_conv_bn_kernel(%arg0: i32, %arg1: memref<48x196xf32, #tpu.memory_space<vmem>>, %arg2: memref<48x48xf32, #tpu.memory_space<vmem>>, %arg3: memref<48x2xf32, #tpu.memory_space<vmem>>, %arg4: memref<48x196xf32, #tpu.memory_space<vmem>>) attributes {dimension_semantics = [#tpu.dimension_semantics<arbitrary>], iteration_bounds = array<i64: 1>, scalar_prefetch = 0 : i64, scratch_operands = 0 : i64, tpu.core_type = #tpu.core_type<tc>, window_params = [{pipeline_mode = #tpu.pipeline_mode<synchronous>, transform_indices = @transform_0, window_bounds = array<i64: 48, 196>}, {pipeline_mode = #tpu.pipeline_mode<synchronous>, transform_indices = @transform_1, window_bounds = array<i64: 48, 48>}, {pipeline_mode = #tpu.pipeline_mode<synchronous>, transform_indices = @transform_2, window_bounds = array<i64: 48, 2>}, {pipeline_mode = #tpu.pipeline_mode<synchronous>, transform_indices = @transform_3, window_bounds = array<i64: 48, 196>}]} {
    %c0 = arith.constant 0 : index
    %c0_0 = arith.constant 0 : index
    %0 = vector.load %arg2[%c0, %c0_0] : memref<48x48xf32, #tpu.memory_space<vmem>>, vector<48x48xf32>
    %c0_1 = arith.constant 0 : index
    %c0_2 = arith.constant 0 : index
    %1 = vector.load %arg1[%c0_1, %c0_2] : memref<48x196xf32, #tpu.memory_space<vmem>>, vector<48x196xf32>
    %cst = arith.constant dense<0.000000e+00> : vector<48x196xf32>
    %2 = tpu.matmul %0, %1, %cst {dimension_numbers = #tpu.dot_dimension_numbers<[1], [0], [0], [1], [0, 0, 1, 1], [], []>} : vector<48x48xf32>, vector<48x196xf32>, vector<48x196xf32> -> vector<48x196xf32>
    %cst_3 = arith.constant dense<0.000000e+00> : vector<48xf32>
    %3 = vector.multi_reduction <add>, %2, %cst_3 [1] : vector<48x196xf32> to vector<48xf32>
    %4 = vector.shape_cast %3 : vector<48xf32> to vector<48x1xf32>
    %cst_4 = arith.constant 0.00510204071 : f32
    %5 = vector.broadcast %cst_4 : f32 to vector<48x1xf32>
    %6 = arith.mulf %4, %5 : vector<48x1xf32>
    %7 = vector.broadcast %6 : vector<48x1xf32> to vector<48x196xf32>
    %8 = arith.subf %2, %7 : vector<48x196xf32>
    %9 = arith.mulf %8, %8 : vector<48x196xf32>
    %cst_5 = arith.constant dense<0.000000e+00> : vector<48xf32>
    %10 = vector.multi_reduction <add>, %9, %cst_5 [1] : vector<48x196xf32> to vector<48xf32>
    %11 = vector.shape_cast %10 : vector<48xf32> to vector<48x1xf32>
    %cst_6 = arith.constant 0.00510204071 : f32
    %12 = vector.broadcast %cst_6 : f32 to vector<48x1xf32>
    %13 = arith.mulf %11, %12 : vector<48x1xf32>
    %cst_7 = arith.constant 9.99999974E-6 : f32
    %14 = vector.broadcast %cst_7 : f32 to vector<48x1xf32>
    %15 = arith.addf %13, %14 : vector<48x1xf32>
    %16 = math.rsqrt %15 : vector<48x1xf32>
    %c0_8 = arith.constant 0 : index
    %c0_9 = arith.constant 0 : index
    %17 = vector.load %arg3[%c0_8, %c0_9] : memref<48x2xf32, #tpu.memory_space<vmem>>, vector<48x1xf32>
    %18 = arith.mulf %17, %16 : vector<48x1xf32>
    %c0_10 = arith.constant 0 : index
    %c1 = arith.constant 1 : index
    %19 = vector.load %arg3[%c0_10, %c1] : memref<48x2xf32, #tpu.memory_space<vmem>>, vector<48x1xf32>
    %20 = vector.broadcast %18 : vector<48x1xf32> to vector<48x196xf32>
    %21 = arith.mulf %8, %20 : vector<48x196xf32>
    %22 = vector.broadcast %19 : vector<48x1xf32> to vector<48x196xf32>
    %23 = arith.addf %21, %22 : vector<48x196xf32>
    %c0_11 = arith.constant 0 : index
    %c0_12 = arith.constant 0 : index
    %24 = vector.load %arg4[%c0_11, %c0_12] : memref<48x196xf32, #tpu.memory_space<vmem>>, vector<48x196xf32>
    tpu.vector_store %arg4[%c0_11, %c0_12], %23 {strides = array<i32>} : memref<48x196xf32, #tpu.memory_space<vmem>>, vector<48x196xf32>,
    return
  }
  func.func @transform_0(%arg0: i32) -> (i32, i32) {
    %c0_i32 = arith.constant 0 : i32
    %c0_i32_0 = arith.constant 0 : i32
    %c0_i32_1 = arith.constant 0 : i32
    return %c0_i32, %c0_i32_0 : i32, i32
  }
  func.func @transform_1(%arg0: i32) -> (i32, i32) {
    %c0_i32 = arith.constant 0 : i32
    %c0_i32_0 = arith.constant 0 : i32
    %c0_i32_1 = arith.constant 0 : i32
    return %c0_i32, %c0_i32_0 : i32, i32
  }
  func.func @transform_2(%arg0: i32) -> (i32, i32) {
    %c0_i32 = arith.constant 0 : i32
    %c0_i32_0 = arith.constant 0 : i32
    %c0_i32_1 = arith.constant 0 : i32
    return %c0_i32, %c0_i32_0 : i32, i32
  }
  func.func @transform_3(%arg0: i32) -> (i32, i32) {
    %c0_i32 = arith.constant 0 : i32
    %c0_i32_0 = arith.constant 0 : i32
    %c0_i32_1 = arith.constant 0 : i32
    return %c0_i32, %c0_i32_0 : i32, i32
  }
}

</mosaic_0001>

<bundles_post_ra>
// kernel: conv1x1_batchnorm.1
= control target key start
LH: loop header
LB: loop body
LE: loop exit
PB: predicated region body
PF: predicated region fallthrough
CT: control target
= control target key end

     0   :  { %vm32_vm0 = vcmask 392192   ;;  %v430_v18 = vmov 1   ;;  %vm121_vm1 = vcmask 556032   ;;  %s671_s0 = inlined_call_operand.vmem [shape: f32[48,196], index: 0, kind: input, shape index: {}]   ;;  %s672_s1 = inlined_call_operand.vmem [shape: f32[48,48], index: 1, kind: input, shape index: {}]   ;;  %s673_s2 = inlined_call_operand.vmem [shape: f32[48,2], index: 2, kind: input, shape index: {}]   ;;  %s674_s3 = inlined_call_operand.vmem [shape: f32[48,196], index: 3, kind: output, shape index: {}]  }
   0x1   :  { %v31_v0 = vld [vmem:[%s671_s0 + $0x58] sm:$0xff]  ;;  %v30_v1 = vld [vmem:[%s671_s0 + $0x50] sm:$0xff]  ;;  %v29_v2 = vld [vmem:[%s671_s0 + $0x48] sm:$0xff]  ;;  %410 = vset.pattern.permute.xlu1 %v430_v18  ;;  %413 = vset.pattern.permute.xlu2 %v430_v18 }
   0x2   :  { %96 = vmatpush.msra.mxu1 %v31_v0  ;;  %402 = vmatpush.msra.mxu3 %v31_v0  ;;  %v28_v3 = vld [vmem:[%s671_s0 + $0x40] sm:$0xff]  ;;  %v27_v4 = vld [vmem:[%s671_s0 + $0x38] sm:$0xff]  ;;  %v26_v5 = vld [vmem:[%s671_s0 + $0x30] sm:$0xff] }
   0x3   :  { %61 = vmatpush.msra.mxu0 %v30_v1  ;;  %396 = vmatpush.msra.mxu2 %v30_v1  ;;  %v25_v6 = vld [vmem:[%s671_s0 + $0x28] sm:$0xff]  ;;  %v24_v7 = vld [vmem:[%s671_s0 + $0x20] sm:$0xff]  ;;  %v23_v8 = vld [vmem:[%s671_s0 + $0x18] sm:$0xff] }
   0x4   :  { %97 = vmatpush.msra.mxu1 %v29_v2  ;;  %403 = vmatpush.msra.mxu3 %v29_v2  ;;  %v22_v9 = vld [vmem:[%s671_s0 + $0x10] sm:$0xff]  ;;  %v21_v10 = vld [vmem:[%s671_s0 + $0x8] sm:$0xff]  ;;  %v20_v11 = vld [vmem:[%s671_s0] sm:$0xff] }
   0x5   :  { %62 = vmatpush.msra.mxu0 %v28_v3  ;;  %397 = vmatpush.msra.mxu2 %v28_v3  ;;  %v14_v12 = vld [vmem:[%s672_s1] sm:$0xff]  ;;  %v17_v13 = vld [vmem:[%s672_s1 + $0x18] sm:$0xff]  ;;  %v15_v14 = vld [vmem:[%s672_s1 + $0x8] sm:$0xff] }
   0x6   :  { %98 = vmatpush.msra.mxu1 %v27_v4  ;;  %404 = vmatpush.msra.mxu3 %v27_v4  ;;  %v18_v15 = vld [vmem:[%s672_s1 + $0x20] sm:$0xff]  ;;  %v16_v16 = vld [vmem:[%s672_s1 + $0x10] sm:$0xff]  ;;  %v19_v17 = vld [vmem:[%s672_s1 + $0x28] sm:$0xff] }
   0x7   :  { %63 = vmatpush.msra.mxu0 %v26_v5  ;;  %398 = vmatpush.msra.mxu2 %v26_v5  ;;  %v529_v43 = vld [vmem:[%s673_s2] sm:$0xff] }
   0x8   :  { %99 = vmatpush.msra.mxu1 %v25_v6  ;;  %405 = vmatpush.msra.mxu3 %v25_v6 }
   0x9   :  { %64 = vmatpush.msra.mxu0 %v24_v7  ;;  %399 = vmatpush.msra.mxu2 %v24_v7 }
   0xa   :  { %100 = vmatpush.msra.mxu1 %v23_v8  ;;  %406 = vmatpush.msra.mxu3 %v23_v8 }
   0xb   :  { %65 = vmatpush.msra.mxu0 %v22_v9  ;;  %400 = vmatpush.msra.mxu2 %v22_v9 }
   0xc   :  { %101 = vmatpush.msra.mxu1 %v21_v10  ;;  %407 = vmatpush.msra.mxu3 %v21_v10 }
   0xd   :  { %66 = vmatpush.msra.mxu0 %v20_v11  ;;  %401 = vmatpush.msra.mxu2 %v20_v11 }
   0xe   :  { %390 = vmatmul.msk.f32.vlgmr.msra.gmra.mxu1 %vm32_vm0, %v14_v12  ;;  %393 = vmatmul.msk.f32.vlgmr.msra.gmra.mxu3 %vm32_vm0, %v17_v13 }
   0xf   :  { %384 = vmatmul.msk.f32.vlgmr.msra.gmra.mxu0 %vm32_vm0, %v14_v12  ;;  %387 = vmatmul.msk.f32.vlgmr.msra.gmra.mxu2 %vm32_vm0, %v17_v13 }
  0x16   :  { %391 = vmatmul.msk.f32.gmra.mxu1 %vm32_vm0, %v15_v14  ;;  %394 = vmatmul.msk.f32.gmra.mxu3 %vm32_vm0, %v18_v15 }
  0x17   :  { %385 = vmatmul.msk.f32.gmra.mxu0 %vm32_vm0, %v15_v14  ;;  %388 = vmatmul.msk.f32.gmra.mxu2 %vm32_vm0, %v18_v15 }
  0x1e   :  { %392 = vmatmul.msk.f32.gmra.mxu1 %vm32_vm0, %v16_v16  ;;  %395 = vmatmul.msk.f32.gmra.mxu3 %vm32_vm0, %v19_v17 }
  0x1f   :  { %386 = vmatmul.msk.f32.gmra.mxu0 %vm32_vm0, %v16_v16  ;;  %389 = vmatmul.msk.f32.gmra.mxu2 %vm32_vm0, %v19_v17 }
  0x8b   :  { %v103_v19 = vpop.f32.mrf.mxu1 }
  0x8c   :  { %v68_v20 = vpop.f32.mrf.mxu0  ;;  %v122_v21 = vsel %vm121_vm1, %v103_v19, 0.0 }
  0x8d   :  { %v123_v22 = vadd.f32 %v122_v21, %v68_v20 }
  0x8f   :  { %124 = vadd.xlane.f32.xlu0 %v123_v22 }
  0x91   :  { %v112_v23 = vpop.f32.mrf.mxu3 }
  0x92   :  { %v77_v24 = vpop.f32.mrf.mxu2  ;;  %v134_v25 = vsel %vm121_vm1, %v112_v23, 0.0 }
  0x93   :  { %v106_v26 = vpop.f32.mrf.mxu1  ;;  %v135_v27 = vadd.f32 %v134_v25, %v77_v24 }
  0x94   :  { %v126_v28 = vsel %vm121_vm1, %v106_v26, 0.0  ;;  %v71_v29 = vpop.f32.mrf.mxu0 }
  0x95   :  { %136 = vadd.xlane.f32.xlu1 %v135_v27  ;;  %v127_v30 = vadd.f32 %v126_v28, %v71_v29 }
  0x97   :  { %128 = vadd.xlane.f32.xlu0 %v127_v30  ;;  %v595_v30 = vld [vmem:[%s673_s2 + $0x10] sm:$0xff] }
  0x99   :  { %v115_v31 = vpop.f32.mrf.mxu3 }
  0x9a   :  { %v80_v32 = vpop.f32.mrf.mxu2  ;;  %v138_v33 = vsel %vm121_vm1, %v115_v31, 0.0 }
  0x9b   :  { %v109_v34 = vpop.f32.mrf.mxu1  ;;  %v139_v35 = vadd.f32 %v138_v33, %v80_v32 }
  0x9c   :  { %v130_v36 = vsel %vm121_vm1, %v109_v34, 0.0  ;;  %v74_v37 = vpop.f32.mrf.mxu0 }
  0x9d   :  { %v131_v38 = vadd.f32 %v130_v36, %v74_v37  ;;  %140 = vadd.xlane.f32.xlu2 %v139_v35 }
  0x9f   :  { %132 = vadd.xlane.f32.xlu1 %v131_v38 }
  0xa1   :  { %v118_v39 = vpop.f32.mrf.mxu3 }
  0xa2   :  { %v142_v40 = vsel %vm121_vm1, %v118_v39, 0.0  ;;  %v83_v41 = vpop.f32.mrf.mxu2 }
  0xa3   :  { %v143_v42 = vadd.f32 %v142_v40, %v83_v41 }
  0xa5   :  { %144 = vadd.xlane.f32.xlu2 %v143_v42 }
  0xb8   :  { %328 = vperm.xlu1 %410, %v529_v43  }
 0x102   :  { %v125_v44 = vpop.xlane.xlu0 %124 }
 0x103   :  { %v146_v45 = vmul.f32 0.0051020407, %v125_v44 }
 0x105   :  { %v532_v46 = vsub.f32 %v68_v20, %v146_v45  ;;  %v534_v47 = vsub.f32 %v103_v19, %v146_v45 }
 0x107   :  { %v164_v48 = vmul.f32 %v532_v46, %v532_v46  ;;  %v165_v49 = vmul.f32 %v534_v47, %v534_v47 }
 0x108   :  { %v137_v50 = vpop.xlane.xlu1 %136 }
 0x109   :  { %v149_v51 = vmul.f32 0.0051020407, %v137_v50  ;;  %v176_v52 = vsel %vm121_vm1, %v165_v49, 0.0 }
 0x10a   :  { %v129_v53 = vpop.xlane.xlu0 %128  ;;  %v177_v54 = vadd.f32 %v176_v52, %v164_v48 }
 0x10b   :  { %v541_v55 = vsub.f32 %v77_v24, %v149_v51  ;;  %v543_v56 = vsub.f32 %v112_v23, %v149_v51  ;;  %v147_v57 = vmul.f32 0.0051020407, %v129_v53 }
 0x10c   :  { %178 = vadd.xlane.f32.xlu0 %v177_v54 }
 0x10d   :  { %v545_v58 = vsub.f32 %v71_v29, %v147_v57  ;;  %v547_v59 = vsub.f32 %v106_v26, %v147_v57  ;;  %v171_v60 = vmul.f32 %v543_v56, %v543_v56  ;;  %v170_v61 = vmul.f32 %v541_v55, %v541_v55  ;;  %v589_v29 = vld [vmem:[%s673_s2 + $0x18] sm:$0xff] }
 0x10f   :  { %v188_v62 = vsel %vm121_vm1, %v171_v60, 0.0  ;;  %v166_v63 = vmul.f32 %v545_v58, %v545_v58  ;;  %v167_v0 = vmul.f32 %v547_v59, %v547_v59 }
 0x110   :  { %v141_v1 = vpop.xlane.xlu2 %140  ;;  %v189_v5 = vadd.f32 %v188_v62, %v170_v61 }
 0x111   :  { %v150_v2 = vmul.f32 0.0051020407, %v141_v1  ;;  %v180_v3 = vsel %vm121_vm1, %v167_v0, 0.0 }
 0x112   :  { %v133_v4 = vpop.xlane.xlu1 %132  ;;  %v181_v6 = vadd.f32 %v180_v3, %v166_v63 }
 0x113   :  { %v559_v7 = vsub.f32 %v80_v32, %v150_v2  ;;  %v561_v8 = vsub.f32 %v115_v31, %v150_v2  ;;  %v148_v9 = vmul.f32 0.0051020407, %v133_v4  ;;  %v431_v31 = vmov 0  }
 0x114   :  { %190 = vadd.xlane.f32.xlu0 %v189_v5  ;;  %182 = vadd.xlane.f32.xlu1 %v181_v6 }
 0x115   :  { %v563_v10 = vsub.f32 %v74_v37, %v148_v9  ;;  %v565_v11 = vsub.f32 %v109_v34, %v148_v9  ;;  %v173_v12 = vmul.f32 %v561_v8, %v561_v8  ;;  %v172_v13 = vmul.f32 %v559_v7, %v559_v7  ;;  %411 = vset.pattern.permute.xlu0 %v431_v31 }
 0x117   :  { %v192_v14 = vsel %vm121_vm1, %v173_v12, 0.0  ;;  %v168_v15 = vmul.f32 %v563_v10, %v563_v10  ;;  %v169_v16 = vmul.f32 %v565_v11, %v565_v11 }
 0x118   :  { %v145_v17 = vpop.xlane.xlu2 %144  ;;  %v193_v21 = vadd.f32 %v192_v14, %v172_v13 }
 0x119   :  { %v151_v19 = vmul.f32 0.0051020407, %v145_v17  ;;  %v184_v20 = vsel %vm121_vm1, %v169_v16, 0.0 }
 0x11a   :  { %v185_v22 = vadd.f32 %v184_v20, %v168_v15 }
 0x11b   :  { %v577_v23 = vsub.f32 %v83_v41, %v151_v19  ;;  %v579_v24 = vsub.f32 %v118_v39, %v151_v19 }
 0x11c   :  { %194 = vadd.xlane.f32.xlu1 %v193_v21  ;;  %186 = vadd.xlane.f32.xlu2 %v185_v22 }
 0x11d   :  { %v175_v25 = vmul.f32 %v579_v24, %v579_v24  ;;  %v174_v26 = vmul.f32 %v577_v23, %v577_v23 }
 0x11f   :  { %v196_v27 = vsel %vm121_vm1, %v175_v25, 0.0 }
 0x120   :  { %v197_v28 = vadd.f32 %v196_v27, %v174_v26  ;;  %v273_v26 = vld [vmem:[%s673_s2 + $0x8] sm:$0xff] }
 0x124   :  { %198 = vadd.xlane.f32.xlu2 %v197_v28 }
 0x12a   :  { %v598_v32 = vpop.permute.xlu1 %328 }
 0x135   :  { %343 = vperm.xlu1 %410, %v589_v29  }
 0x13c   :  { %338 = vperm.xlu2 %413, %v595_v30  }
 0x13d   :  { %415 = vset.pattern.permute.xlu1 %v431_v31 }
 0x144   :  { %414 = vset.pattern.permute.xlu2 %v431_v31 }
 0x17f   :  { %v179_v33 = vpop.xlane.xlu0 %178 }
 0x180   :  { %v200_v34 = vmul.f32 0.0051020407, %v179_v33 }
 0x182   :  { %v206_v35 = vadd.f32 1e-05, %v200_v34 }
 0x184   :  { %418 = vrsqrt.f32 %v206_v35  ;;  %vm218_vm3 = vweird.f32 %v206_v35 }
 0x187   :  { %v191_v36 = vpop.xlane.xlu0 %190  ;;  %v183_v37 = vpop.xlane.xlu1 %182 }
 0x188   :  { %v203_v38 = vmul.f32 0.0051020407, %v191_v36  ;;  %v201_v39 = vmul.f32 0.0051020407, %v183_v37 }
 0x18a   :  { %v419_v40 = vpop.eup %418  ;;  %v209_v41 = vadd.f32 1e-05, %v203_v38  ;;  %v207_v42 = vadd.f32 1e-05, %v201_v39 }
 0x18b   :  { %v213_v44 = vmul.f32 %v419_v40, %v206_v35  ;;  %vm219_vm2 = vweird.f32 %v419_v40 }
 0x18c   :  { %420 = vrsqrt.f32 %v209_v41  ;;  %vm220_vm4 = vmor %vm218_vm3, %vm219_vm2  ;;  %vm248_vm6 = vweird.f32 %v209_v41  ;;  %vm228_vm9 = vweird.f32 %v207_v42 }
 0x18d   :  { %v214_v45 = vmul.f32 %v419_v40, %v213_v44  ;;  %422 = vrsqrt.f32 %v207_v42 }
 0x18f   :  { %v215_v48 = vmul.f32 0.5, %v214_v45  ;;  %v187_v49 = vpop.xlane.xlu2 %186  ;;  %v195_v50 = vpop.xlane.xlu1 %194 }
 0x190   :  { %v202_v51 = vmul.f32 0.0051020407, %v187_v49  ;;  %v204_v52 = vmul.f32 0.0051020407, %v195_v50 }
 0x191   :  { %v216_v53 = vsub.f32 1.5, %v215_v48 }
 0x192   :  { %v421_v54 = vpop.eup %420  ;;  %v208_v57 = vadd.f32 1e-05, %v202_v51  ;;  %v210_v60 = vadd.f32 1e-05, %v204_v52 }
 0x193   :  { %v423_v61 = vpop.eup %422  ;;  %v243_v62 = vmul.f32 %v421_v54, %v209_v41  ;;  %v217_v63 = vmul.f32 %v419_v40, %v216_v53  ;;  %vm249_vm5 = vweird.f32 %v421_v54  ;;  %v276_v41 = vld [vmem:[%s673_s2 + $0x20] sm:$0xff]  ;;  %v277_v53 = vld [vmem:[%s673_s2 + $0x28] sm:$0xff] }
 0x194   :  { %v223_v0 = vmul.f32 %v423_v61, %v207_v42  ;;  %424 = vrsqrt.f32 %v208_v57  ;;  %vm229_vm7 = vweird.f32 %v423_v61  ;;  %vm250_vm8 = vmor %vm248_vm6, %vm249_vm5  ;;  %vm238_vm13 = vweird.f32 %v208_v57 }
 0x195   :  { %v244_v1 = vmul.f32 %v421_v54, %v243_v62  ;;  %426 = vrsqrt.f32 %v210_v60  ;;  %v221_v2 = vsel %vm220_vm4, %v419_v40, %v217_v63  ;;  %vm230_vm10 = vmor %vm228_vm9, %vm229_vm7  ;;  %vm258_vm14 = vweird.f32 %v210_v60 }
 0x196   :  { %v224_v3 = vmul.f32 %v423_v61, %v223_v0  ;;  %v278_v4 = vmul.f32 %v529_v43, %v221_v2 }
 0x197   :  { %v245_v5 = vmul.f32 0.5, %v244_v1  ;;  %v199_v6 = vpop.xlane.xlu2 %198 }
 0x198   :  { %v225_v9 = vmul.f32 0.5, %v224_v3  ;;  %v205_v12 = vmul.f32 0.0051020407, %v199_v6  ;;  %286 = vperm.xlu0 %411, %v278_v4  }
 0x199   :  { %v246_v13 = vsub.f32 1.5, %v245_v5 }
 0x19a   :  { %v425_v14 = vpop.eup %424  ;;  %v226_v15 = vsub.f32 1.5, %v225_v9  ;;  %v211_v16 = vadd.f32 1e-05, %v205_v12 }
 0x19b   :  { %v427_v17 = vpop.eup %426  ;;  %v233_v19 = vmul.f32 %v425_v14, %v208_v57  ;;  %v247_v20 = vmul.f32 %v421_v54, %v246_v13  ;;  %vm239_vm11 = vweird.f32 %v425_v14 }
 0x19c   :  { %v253_v21 = vmul.f32 %v427_v17, %v210_v60  ;;  %428 = vrsqrt.f32 %v211_v16  ;;  %v227_v25 = vmul.f32 %v423_v61, %v226_v15  ;;  %vm259_vm12 = vweird.f32 %v427_v17  ;;  %vm240_vm15 = vmor %vm238_vm13, %vm239_vm11 }
 0x19d   :  { %v234_v43 = vmul.f32 %v425_v14, %v233_v19  ;;  %v251_v22 = vsel %vm250_vm8, %v421_v54, %v247_v20  ;;  %vm260_vm0 = vmor %vm258_vm14, %vm259_vm12  ;;  %vm268_vm3 = vweird.f32 %v211_v16 }
 0x19e   :  { %v254_v27 = vmul.f32 %v427_v17, %v253_v21  ;;  %v281_v28 = vmul.f32 %v589_v29, %v251_v22  ;;  %v231_v33 = vsel %vm230_vm10, %v423_v61, %v227_v25 }
 0x19f   :  { %v235_v31 = vmul.f32 0.5, %v234_v43  ;;  %v279_v35 = vmul.f32 %v273_v26, %v231_v33 }
 0x1a0   :  { %v255_v34 = vmul.f32 0.5, %v254_v27  ;;  %301 = vperm.xlu2 %414, %v281_v28   ;;  %412 = vset.pattern.permute.xlu0 %v430_v18 }
 0x1a1   :  { %v236_v36 = vsub.f32 1.5, %v235_v31  ;;  %333 = vperm.xlu0 %412, %v273_v26   ;;  %291 = vperm.xlu1 %415, %v279_v35  }
 0x1a2   :  { %v429_v37 = vpop.eup %428  ;;  %v256_v38 = vsub.f32 1.5, %v255_v34 }
 0x1a3   :  { %v237_v39 = vmul.f32 %v425_v14, %v236_v36  ;;  %v263_v40 = vmul.f32 %v429_v37, %v211_v16  ;;  %vm269_vm2 = vweird.f32 %v429_v37 }
 0x1a4   :  { %v257_v29 = vmul.f32 %v427_v17, %v256_v38  ;;  %vm270_vm4 = vmor %vm268_vm3, %vm269_vm2 }
 0x1a5   :  { %v241_v42 = vsel %vm240_vm15, %v425_v14, %v237_v39  ;;  %v264_v44 = vmul.f32 %v429_v37, %v263_v40 }
 0x1a6   :  { %v280_v45 = vmul.f32 %v595_v30, %v241_v42  ;;  %v261_v48 = vsel %vm260_vm0, %v427_v17, %v257_v29  ;;  %v339_v30 = vpop.permute.xlu2 %338 }
 0x1a7   :  { %v265_v49 = vmul.f32 0.5, %v264_v44  ;;  %v282_v50 = vmul.f32 %v276_v41, %v261_v48  ;;  %v344_v63 = vpop.permute.xlu1 %343 }
 0x1a8   :  { %296 = vperm.xlu2 %414, %v280_v45  }
 0x1a9   :  { %v266_v51 = vsub.f32 1.5, %v265_v49  ;;  %306 = vperm.xlu1 %415, %v282_v50  }
 0x1ab   :  { %v267_v52 = vmul.f32 %v429_v37, %v266_v51 }
 0x1ad   :  { %v271_v54 = vsel %vm270_vm4, %v429_v37, %v267_v52 }
 0x1ae   :  { %v283_v57 = vmul.f32 %v277_v53, %v271_v54 }
 0x1b0   :  { %311 = vperm.xlu2 %414, %v283_v57  }
 0x1b1   :  { %417 = vset.pattern.permute.xlu1 %v430_v18 }
 0x1b2   :  { %353 = vperm.xlu1 %417, %v277_v53  }
 0x1b8   :  { %416 = vset.pattern.permute.xlu2 %v430_v18 }
 0x1b9   :  { %348 = vperm.xlu2 %416, %v276_v41  }
 0x1fa   :  { %v302_v60 = vpop.permute.xlu2 %301 }
 0x1fb   :  { %v320_v61 = vmul.f32 %v302_v60, %v541_v55  ;;  %v321_v62 = vmul.f32 %v302_v60, %v543_v56 }
 0x1fd   :  { %v362_v0 = vadd.f32 %v344_v63, %v320_v61  ;;  %v363_v1 = vadd.f32 %v344_v63, %v321_v62 }
 0x1ff   :  { %374 = vst [vmem:[%s674_s3 + $0x30] sm:$0xff] %v362_v0 }
 0x200   :  { %375 = vst.msk [vmem:[%s674_s3 + $0x38] sm:$0xff] %vm121_vm1, %v363_v1 }
 0x202   :  { %v297_v18 = vpop.permute.xlu2 %296 }
 0x203   :  { %v318_v2 = vmul.f32 %v297_v18, %v563_v10  ;;  %v319_v3 = vmul.f32 %v297_v18, %v565_v11 }
 0x205   :  { %v360_v55 = vadd.f32 %v339_v30, %v318_v2  ;;  %v361_v4 = vadd.f32 %v339_v30, %v319_v3 }
 0x207   :  { %372 = vst [vmem:[%s674_s3 + $0x20] sm:$0xff] %v360_v55 }
 0x208   :  { %373 = vst.msk [vmem:[%s674_s3 + $0x28] sm:$0xff] %vm121_vm1, %v361_v4 }
 0x20a   :  { %v287_v56 = vpop.permute.xlu0 %286  ;;  %v312_v9 = vpop.permute.xlu2 %311 }
 0x20b   :  { %v314_v5 = vmul.f32 %v287_v56, %v532_v46  ;;  %v315_v6 = vmul.f32 %v287_v56, %v534_v47  ;;  %v325_v21 = vmul.f32 %v312_v9, %v579_v24 }
 0x20d   :  { %v356_v10 = vadd.f32 %v598_v32, %v314_v5  ;;  %v357_v11 = vadd.f32 %v598_v32, %v315_v6 }
 0x20f   :  { %368 = vst [vmem:[%s674_s3] sm:$0xff] %v356_v10 }
 0x210   :  { %369 = vst.msk [vmem:[%s674_s3 + $0x8] sm:$0xff] %vm121_vm1, %v357_v11 }
 0x213   :  { %v292_v12 = vpop.permute.xlu1 %291  ;;  %v334_v13 = vpop.permute.xlu0 %333 }
 0x214   :  { %v316_v46 = vmul.f32 %v292_v12, %v545_v58  ;;  %v317_v47 = vmul.f32 %v292_v12, %v547_v59  ;;  %v349_v16 = vpop.permute.xlu2 %348  ;;  %v324_v59 = vmul.f32 %v312_v9, %v577_v23 }
 0x216   :  { %v358_v14 = vadd.f32 %v334_v13, %v316_v46  ;;  %v359_v15 = vadd.f32 %v334_v13, %v317_v47 }
 0x218   :  { %370 = vst [vmem:[%s674_s3 + $0x10] sm:$0xff] %v358_v14 }
 0x219   :  { %371 = vst.msk [vmem:[%s674_s3 + $0x18] sm:$0xff] %vm121_vm1, %v359_v15 }
 0x21b   :  { %v307_v32 = vpop.permute.xlu1 %306 }
 0x21c   :  { %v322_v17 = vmul.f32 %v307_v32, %v559_v7  ;;  %v323_v19 = vmul.f32 %v307_v32, %v561_v8 }
 0x21e   :  { %v364_v58 = vadd.f32 %v349_v16, %v322_v17  ;;  %v365_v20 = vadd.f32 %v349_v16, %v323_v19 }
 0x220   :  { %376 = vst [vmem:[%s674_s3 + $0x40] sm:$0xff] %v364_v58 }
 0x221   :  { %377 = vst.msk [vmem:[%s674_s3 + $0x48] sm:$0xff] %vm121_vm1, %v365_v20 }
 0x224   :  { %v354_v43 = vpop.permute.xlu1 %353 }
 0x225   :  { %v366_v22 = vadd.f32 %v354_v43, %v324_v59  ;;  %v367_v7 = vadd.f32 %v354_v43, %v325_v21 }
 0x227   :  { %378 = vst [vmem:[%s674_s3 + $0x50] sm:$0xff] %v366_v22 }
 0x228   :  { %379 = vst.msk [vmem:[%s674_s3 + $0x58] sm:$0xff] %vm121_vm1, %v367_v7 }

</bundles_post_ra>
